<compile_context>
chip_gen: v6e
topology: v6e:2x2x1
jax: 0.10.0
libtpu: 0.0.40
codegen_flags: <defaults>
</compile_context>

<pallas_src>
import functools

import jax
import jax.numpy as jnp
from jax import lax
from jax.experimental import pallas as pl
from jax.experimental.pallas import tpu as pltpu


def _streaming_lse_kernel(x_ref, f_ref, lse_ref, m_scr, l_scr, *,
                          inv_temp, n_valid, tile_n, tiles_per_split,
                          needs_mask):
    """One (split, tile) step of an online log-sum-exp over the memory bank.

    x_ref:   (B, D)       queries, resident across the whole grid (f32)
    f_ref:   (TILE_N, D)  streamed bank tile (native dtype)
    lse_ref: (1, B, 1)    per-split partial log-sum-exp (written on last tile)
    m_scr:   (B, 1) f32   running max
    l_scr:   (B, 1) f32   running sum of exp
    """
    n_idx = pl.program_id(1)

    # Init running (max, sum) at the start of each split's reduction.
    @pl.when(n_idx == 0)
    def _():
        m_scr[...] = jnp.full_like(m_scr, -jnp.inf)
        l_scr[...] = jnp.zeros_like(l_scr)

    # Fold the temperature into the tiny (B, D) LHS instead of scaling the
    # (B, TILE_N) logits tile every step.
    x = x_ref[...] * inv_temp                       # (B, D) f32
    f = f_ref[...]                                  # (TILE_N, D) native dtype
    s = lax.dot_general(x.astype(f.dtype), f,
                        (((1,), (1,)), ((), ())),
                        preferred_element_type=jnp.float32)   # (B, TILE_N) f32

    if needs_mask:
        # Mask padded bank rows (only compiled in when N was padded).
        start = (pl.program_id(0) * tiles_per_split + n_idx) * tile_n
        col = start + lax.broadcasted_iota(jnp.int32, s.shape, 1)
        s = jnp.where(col < n_valid, s, -jnp.inf)

    # Online log-sum-exp update (all elementwise math in f32).
    m_prev = m_scr[...]
    m_new = jnp.maximum(m_prev, jnp.max(s, axis=1, keepdims=True))
    alpha = jnp.exp(m_prev - m_new)
    p = jnp.exp(s - m_new)
    l_scr[...] = alpha * l_scr[...] + jnp.sum(p, axis=1, keepdims=True)
    m_scr[...] = m_new

    # Finalize this split's partial LSE.
    @pl.when(n_idx == pl.num_programs(1) - 1)
    def _():
        lse_ref[0] = m_scr[...] + jnp.log(l_scr[...])


def memory_bank_forward(inputs, features, labels, indices, temp, *,
                        tile_n=512, num_splits=2):
    """Pallas forward pass of MemoryBank. Returns a scalar f32 loss."""
    B, D = inputs.shape
    N, Df = features.shape
    assert D == Df

    inv_temp = 1.0 / float(temp)
    inputs_f32 = inputs.astype(jnp.float32)

    # Target logits gathered on the JAX side: a B-row gather is trivial next
    # to streaming the whole N-row bank inside the kernel.
    targets = labels[indices.astype(jnp.int32)].astype(jnp.int32)    # (B,)
    f_tgt = features[targets].astype(jnp.float32)                    # (B, D)
    picked = jnp.sum(inputs_f32 * f_tgt, axis=-1) * inv_temp         # (B,)

    # ---- tiling geometry over the bank (N) axis ----
    def _round_up(x, m):
        return (x + m - 1) // m * m

    tile_n_eff = min(int(tile_n), _round_up(N, 128))   # lane-dense multiple of 128
    n_tiles = pl.cdiv(N, tile_n_eff)
    splits = max(1, min(int(num_splits), n_tiles))
    tiles_per_split = pl.cdiv(n_tiles, splits)
    # Ensure every split starts on valid rows (keeps its running max finite).
    while splits > 1 and (splits - 1) * tiles_per_split * tile_n_eff >= N:
        splits -= 1
        tiles_per_split = pl.cdiv(n_tiles, splits)
    n_pad = splits * tiles_per_split * tile_n_eff
    needs_mask = (n_pad != N)
    feats = jnp.pad(features, ((0, n_pad - N), (0, 0))) if needs_mask else features

    kernel = functools.partial(
        _streaming_lse_kernel,
        inv_temp=inv_temp, n_valid=N, tile_n=tile_n_eff,
        tiles_per_split=tiles_per_split, needs_mask=needs_mask)

    itemsize = jnp.dtype(feats.dtype).itemsize
    cost = pl.CostEstimate(
        flops=2 * B * D * n_pad,
        transcendentals=B * n_pad,
        bytes_accessed=n_pad * D * itemsize + B * D * 4 + splits * B * 4)

    lse_parts = pl.pallas_call(
        kernel,
        out_shape=jax.ShapeDtypeStruct((splits, B, 1), jnp.float32),
        grid_spec=pltpu.PrefetchScalarGridSpec(
            num_scalar_prefetch=0,
            grid=(splits, tiles_per_split),
            in_specs=[
                # Queries: resident (same block every step).
                pl.BlockSpec((B, D), lambda s, n: (0, 0)),
                # Memory bank: streamed tile-by-tile, double-buffered by Pallas.
                pl.BlockSpec((tile_n_eff, D),
                             lambda s, n: (s * tiles_per_split + n, 0)),
            ],
            out_specs=pl.BlockSpec((1, B, 1), lambda s, n: (s, 0, 0)),
            scratch_shapes=[pltpu.VMEM((B, 1), jnp.float32),   # running max
                            pltpu.VMEM((B, 1), jnp.float32)],  # running sum
        ),
        compiler_params=pltpu.CompilerParams(
            dimension_semantics=("parallel", "arbitrary")),
        cost_estimate=cost,
    )(inputs_f32, feats)

    lse_parts = lse_parts[..., 0]                              # (splits, B)
    lse = jax.nn.logsumexp(lse_parts, axis=0) if splits > 1 else lse_parts[0]
    # nll_loss(log_softmax(logits), targets) == mean(lse_i - logits[i, t_i])
    return jnp.mean(lse - picked)


def _reference_forward(inputs, features, labels, indices, temp):
    logits = (inputs @ features.T) / temp
    logsm = jax.nn.log_softmax(logits, axis=1)
    targets = labels[indices.astype(jnp.int32)]
    picked = logsm[jnp.arange(inputs.shape[0]), targets]
    return -jnp.mean(picked)


if __name__ == "__main__":
    # Shapes consistent with the module: D = num_feature_dims, N = num_samples.
    B, D, N = 8, 32, 1024
    TEMP = 0.05

    key = jax.random.PRNGKey(0)
    k_in, k_feat, k_idx, k_lab = jax.random.split(key, 4)

    inputs = jax.random.normal(k_in, (B, D), dtype=jnp.float32)
    # __init__ registers a zero buffer; use L2-normalized random rows so the
    # test exercises non-trivial numerics.
    features = jax.random.normal(k_feat, (N, D), dtype=jnp.float32)
    features = features / jnp.linalg.norm(features, axis=1, keepdims=True)
    labels = jax.random.randint(k_lab, (N,), 0, N, dtype=jnp.int32)
    indices = jax.random.randint(k_idx, (B,), 0, N, dtype=jnp.int32)

    # Main case: multi-tile stream, two parallel splits (exercises both cores
    # on v7x, sequential but correct on v5e/v6e).
    loss = memory_bank_forward(inputs, features, labels, indices, TEMP,
                               tile_n=256, num_splits=2)
    loss = jax.block_until_ready(loss)
    ref = _reference_forward(inputs, features, labels, indices, TEMP)
    assert jnp.isfinite(loss), loss
    assert jnp.allclose(loss, ref, rtol=2e-3, atol=1e-3), (loss, ref)

    # Ragged case: N not a multiple of the tile -> exercises in-kernel masking.
    N2 = 200
    feat2 = jax.random.normal(k_feat, (N2, D), dtype=jnp.float32)
    feat2 = feat2 / jnp.linalg.norm(feat2, axis=1, keepdims=True)
    lab2 = jax.random.randint(k_lab, (N2,), 0, N2, dtype=jnp.int32)
    idx2 = jax.random.randint(k_idx, (B,), 0, N2, dtype=jnp.int32)
    loss2 = jax.block_until_ready(
        memory_bank_forward(inputs, feat2, lab2, idx2, TEMP))
    ref2 = _reference_forward(inputs, feat2, lab2, idx2, TEMP)
    assert jnp.isfinite(loss2), loss2
    assert jnp.allclose(loss2, ref2, rtol=2e-3, atol=1e-3), (loss2, ref2)

    print("KERNEL_OK")
</pallas_src>

<mosaic_0001>
module attributes {stable_mosaic.version = 11 : i64} {
  func.func @_streaming_lse_kernel(%arg0: i32, %arg1: i32, %arg2: memref<8x32xf32, #tpu.memory_space<vmem>>, %arg3: memref<256x32xf32, #tpu.memory_space<vmem>>, %arg4: memref<1x8x1xf32, #tpu.memory_space<vmem>>, %arg5: memref<8x1xf32, #tpu.memory_space<vmem>>, %arg6: memref<8x1xf32, #tpu.memory_space<vmem>>) attributes {dimension_semantics = [#tpu.dimension_semantics<parallel>, #tpu.dimension_semantics<arbitrary>], iteration_bounds = array<i64: 2, 2>, scalar_prefetch = 0 : i64, scratch_operands = 2 : i64, tpu.core_type = #tpu.core_type<tc>, window_params = [{pipeline_mode = #tpu.pipeline_mode<synchronous>, transform_indices = @transform_0, window_bounds = array<i64: 8, 32>}, {transform_indices = @transform_1, window_bounds = array<i64: 256, 32>}, {transform_indices = @transform_2, window_bounds = array<i64: 1, 8, 1>}]} {
    %c0_i32 = arith.constant 0 : i32
    %0 = arith.cmpi eq, %arg1, %c0_i32 : i32
    %1 = arith.extui %0 : i1 to i32
    %c0_i32_0 = arith.constant 0 : i32
    %2 = arith.cmpi ne, %1, %c0_i32_0 : i32
    scf.if %2 {
      %cst_16 = arith.constant 0xFF800000 : f32
      %27 = vector.broadcast %cst_16 : f32 to vector<8x1xf32>
      %c0_17 = arith.constant 0 : index
      %c0_18 = arith.constant 0 : index
      %28 = vector.load %arg5[%c0_17, %c0_18] : memref<8x1xf32, #tpu.memory_space<vmem>>, vector<8x1xf32>
      tpu.vector_store %arg5[%c0_17, %c0_18], %27 {strides = array<i32>} : memref<8x1xf32, #tpu.memory_space<vmem>>, vector<8x1xf32>,
      %cst_19 = arith.constant 0.000000e+00 : f32
      %29 = vector.broadcast %cst_19 : f32 to vector<8x1xf32>
      %c0_20 = arith.constant 0 : index
      %c0_21 = arith.constant 0 : index
      %30 = vector.load %arg6[%c0_20, %c0_21] : memref<8x1xf32, #tpu.memory_space<vmem>>, vector<8x1xf32>
      tpu.vector_store %arg6[%c0_20, %c0_21], %29 {strides = array<i32>} : memref<8x1xf32, #tpu.memory_space<vmem>>, vector<8x1xf32>,
    } else {
    }
    %c0 = arith.constant 0 : index
    %c0_1 = arith.constant 0 : index
    %3 = vector.load %arg2[%c0, %c0_1] : memref<8x32xf32, #tpu.memory_space<vmem>>, vector<8x32xf32>
    %cst = arith.constant 2.000000e+01 : f32
    %4 = vector.broadcast %cst : f32 to vector<8x32xf32>
    %5 = arith.mulf %3, %4 : vector<8x32xf32>
    %c0_2 = arith.constant 0 : index
    %c0_3 = arith.constant 0 : index
    %6 = vector.load %arg3[%c0_2, %c0_3] : memref<256x32xf32, #tpu.memory_space<vmem>>, vector<256x32xf32>
    %cst_4 = arith.constant dense<0.000000e+00> : vector<8x256xf32>
    %7 = tpu.matmul %5, %6, %cst_4 {dimension_numbers = #tpu.dot_dimension_numbers<[1], [1], [0], [0], [0, 0, 1, 0], [], []>} : vector<8x32xf32>, vector<256x32xf32>, vector<8x256xf32> -> vector<8x256xf32>
    %c0_5 = arith.constant 0 : index
    %c0_6 = arith.constant 0 : index
    %8 = vector.load %arg5[%c0_5, %c0_6] : memref<8x1xf32, #tpu.memory_space<vmem>>, vector<8x1xf32>
    %cst_7 = arith.constant dense<0xFF800000> : vector<8xf32>
    %9 = vector.multi_reduction <maximumf>, %7, %cst_7 [1] : vector<8x256xf32> to vector<8xf32>
    %10 = vector.shape_cast %9 : vector<8xf32> to vector<8x1xf32>
    %11 = arith.maximumf %8, %10 : vector<8x1xf32>
    %12 = arith.subf %8, %11 : vector<8x1xf32>
    %13 = math.exp %12 : vector<8x1xf32>
    %14 = vector.broadcast %11 : vector<8x1xf32> to vector<8x256xf32>
    %15 = arith.subf %7, %14 : vector<8x256xf32>
    %16 = math.exp %15 : vector<8x256xf32>
    %c0_8 = arith.constant 0 : index
    %c0_9 = arith.constant 0 : index
    %17 = vector.load %arg6[%c0_8, %c0_9] : memref<8x1xf32, #tpu.memory_space<vmem>>, vector<8x1xf32>
    %18 = arith.mulf %13, %17 : vector<8x1xf32>
    %cst_10 = arith.constant dense<0.000000e+00> : vector<8xf32>
    %19 = vector.multi_reduction <add>, %16, %cst_10 [1] : vector<8x256xf32> to vector<8xf32>
    %20 = vector.shape_cast %19 : vector<8xf32> to vector<8x1xf32>
    %21 = arith.addf %18, %20 : vector<8x1xf32>
    %c0_11 = arith.constant 0 : index
    %c0_12 = arith.constant 0 : index
    %22 = vector.load %arg6[%c0_11, %c0_12] : memref<8x1xf32, #tpu.memory_space<vmem>>, vector<8x1xf32>
    tpu.vector_store %arg6[%c0_11, %c0_12], %21 {strides = array<i32>} : memref<8x1xf32, #tpu.memory_space<vmem>>, vector<8x1xf32>,
    %c0_13 = arith.constant 0 : index
    %c0_14 = arith.constant 0 : index
    %23 = vector.load %arg5[%c0_13, %c0_14] : memref<8x1xf32, #tpu.memory_space<vmem>>, vector<8x1xf32>
    tpu.vector_store %arg5[%c0_13, %c0_14], %11 {strides = array<i32>} : memref<8x1xf32, #tpu.memory_space<vmem>>, vector<8x1xf32>,
    %c1_i32 = arith.constant 1 : i32
    %24 = arith.cmpi eq, %arg1, %c1_i32 : i32
    %25 = arith.extui %24 : i1 to i32
    %c0_i32_15 = arith.constant 0 : i32
    %26 = arith.cmpi ne, %25, %c0_i32_15 : i32
    scf.if %26 {
      %c0_16 = arith.constant 0 : index
      %c0_17 = arith.constant 0 : index
      %27 = vector.load %arg5[%c0_16, %c0_17] : memref<8x1xf32, #tpu.memory_space<vmem>>, vector<8x1xf32>
      %c0_18 = arith.constant 0 : index
      %c0_19 = arith.constant 0 : index
      %28 = vector.load %arg6[%c0_18, %c0_19] : memref<8x1xf32, #tpu.memory_space<vmem>>, vector<8x1xf32>
      %29 = math.log %28 : vector<8x1xf32>
      %30 = arith.addf %27, %29 : vector<8x1xf32>
      %c0_20 = arith.constant 0 : index
      %c0_21 = arith.constant 0 : index
      %c0_22 = arith.constant 0 : index
      %31 = vector.load %arg4[%c0_20, %c0_21, %c0_22] : memref<1x8x1xf32, #tpu.memory_space<vmem>>, vector<1x8x1xf32>
      %32 = vector.shape_cast %31 : vector<1x8x1xf32> to vector<8x1xf32>
      %33 = vector.shape_cast %30 : vector<8x1xf32> to vector<1x8x1xf32>
      tpu.vector_store %arg4[%c0_20, %c0_21, %c0_22], %33 {strides = array<i32>} : memref<1x8x1xf32, #tpu.memory_space<vmem>>, vector<1x8x1xf32>,
    } else {
    }
    return
  }
  func.func @transform_0(%arg0: i32, %arg1: i32) -> (i32, i32) {
    %c0_i32 = arith.constant 0 : i32
    %c0_i32_0 = arith.constant 0 : i32
    %c0_i32_1 = arith.constant 0 : i32
    return %c0_i32, %c0_i32_0 : i32, i32
  }
  func.func @transform_1(%arg0: i32, %arg1: i32) -> (i32, i32) {
    %c2_i32 = arith.constant 2 : i32
    %0 = arith.muli %arg0, %c2_i32 : i32
    %1 = arith.addi %0, %arg1 : i32
    %c0_i32 = arith.constant 0 : i32
    %c0_i32_0 = arith.constant 0 : i32
    return %1, %c0_i32 : i32, i32
  }
  func.func @transform_2(%arg0: i32, %arg1: i32) -> (i32, i32, i32) {
    %c0_i32 = arith.constant 0 : i32
    %c0_i32_0 = arith.constant 0 : i32
    %c0_i32_1 = arith.constant 0 : i32
    return %arg0, %c0_i32, %c0_i32_0 : i32, i32, i32
  }
}

</mosaic_0001>

<bundles_post_ra>
// kernel: tpu_custom_call.1
= control target key start
LH: loop header
LB: loop body
LE: loop exit
PB: predicated region body
PF: predicated region fallthrough
CT: control target
= control target key end

     0   :  { %s676_s9 = smov 0   ;;  %s678_s10 = smov 0   ;;  %s809_s0 = inlined_call_operand.vmem [shape: f32[8,32], index: 0, kind: input, shape index: {}]   ;;  %s810_s1 = inlined_call_operand.vmem [shape: f32[1024,32], index: 1, kind: input, shape index: {}]   ;;  %s811_s2 = inlined_call_operand.vmem [shape: f32[2,8,1], index: 2, kind: output, shape index: {}]  }
   0x1   :  { %s680_s11 = smov 0   ;;  %s682_s12 = smov 0  }
   0x2   :  { %s684_s13 = smov 0  }
   0x3 LB: > { %s21_s14 = sadd.s32 1, %s648_s11  ;;  %s24_s15 = sadd.s32 1, %s652_s12  ;;  %s656_s13 = sphi %s684_s13, %s12_s13   ;;  %s652_s12 = sphi %s682_s12, %s815_s12   ;;  %s648_s11 = sphi %s680_s11, %s814_s11   ;;  %s644_s10 = sphi %s678_s10, %s813_s10   ;;  %s640_s9 = sphi %s676_s9, %s812_s9  }
   0x4   : > { %p22_p0 = scmp.ge.s32.totalorder %s21_s14, 2  ;;  %p490_p1 = scmp.ge.s32.totalorder %s656_s13, 1 }
   0x5   : > { %p133_p2 = scmp.lt.s32.totalorder %s656_s13, 5 }
   0x6   : > { %s817_s14 = smov (%p22_p0, %s21_s14), 0  ;;  %s819_s15 = smov (!%p22_p0, %s24_s15), %s652_s12 }
   0x7   : > { %p134_p3 = pnand %p490_p1, %p133_p2  ;;  %p26_p4 = scmp.ge.s32.totalorder %s819_s15, 2 }
   0x8   : > { %s491_s16 = sshll.u32 (!%p134_p3), %s644_s10, 1  ;;  %p166_p5 = scmp.lt.s32.totalorder (!%p134_p3), %s644_s10, 1 }
   0x9   : > { %s821_s15 = smov (%p26_p4, %s819_s15), 0  ;;  %137 = sbr.rel (%p134_p3) target bundleno = 738 (0x2e2), region = 28 }
   0xa   : > { %s157_s17 = sadd.s32 (!%p134_p3), %s640_s9, %s491_s16  ;;  %p495_p7 = scmp.ne.s32.totalorder (!%p134_p3), %s640_s9, 0 }
   0xb   : > { %s492_s18 = sshll.u32 (!%p134_p3), %s157_s17, 5 }
   0xc   : > { %p159_p6 = scmp.lt.s32.totalorder (!%p134_p3), %s492_s18, 127 }
   0xe   : > { %s823_s10 = smov (!%p166_p5, %s644_s10), 1  ;;  %s825_s18 = smov (!%p159_p6, %s492_s18), 127 }
   0xf   : > { %s494_s19 = sshll.u32 %s823_s10, 3  ;;  %s493_s20 = sshll.u32 %s825_s18, 3 }
  0x10   : > { %s712_s23 = scalar_lea.vmem %s811_s2, %s494_s19  ;;  %s717_s26 = scalar_lea.vmem %s810_s1, %s493_s20 }
  0x11   : > { %173 = sbr.rel (%p495_p7) target bundleno = 24 (0x18), region = 32 }
  0x16   : > { %vm174_vm0 = vcmask 7168   ;;  %v658_v0 = vmov -inf   ;;  %v659_v1 = vmov 0.0  }
  0x17   : > { %175 = vst.msk [vmem:[#allocation2] sm:$0xff] %vm174_vm0, %v658_v0  ;;  %176 = vst.msk [vmem:[#allocation3] sm:$0xff] %vm174_vm0, %v659_v1 }
  0x18 PF: > { %v210_v2 = vld [vmem:[%s717_s26 + $0xf8] sm:$0xff]  ;;  %vm211_vm1 = vcmask 261120   ;;  %v209_v4 = vld [vmem:[%s717_s26 + $0xf0] sm:$0xff]  ;;  %v208_v6 = vld [vmem:[%s717_s26 + $0xe8] sm:$0xff]  ;;  %v660_v39 = vmov 0   ;;  %vm407_vm2 = vcmask 7168  }
  0x19   : > { %v194_v3 = vld [vmem:[%s717_s26 + $0x78] sm:$0xff]  ;;  %532 = vmatprep.subr.msk.mxu0 %vm211_vm1, %v210_v2  ;;  %v193_v5 = vld [vmem:[%s717_s26 + $0x70] sm:$0xff]  ;;  %v192_v7 = vld [vmem:[%s717_s26 + $0x68] sm:$0xff]  ;;  %609 = vset.pattern.permute.xlu0 %v660_v39  ;;  %p529_p8 = scmp.ne.s32.totalorder %s640_s9, 1 }
  0x1a   : > { %533 = vmatpush3.xpose.msk.msra.mxu0 %vm211_vm1, %v194_v3  ;;  %v207_v8 = vld [vmem:[%s717_s26 + $0xe0] sm:$0xff]  ;;  %v206_v12 = vld [vmem:[%s717_s26 + $0xd8] sm:$0xff]  ;;  %v205_v14 = vld [vmem:[%s717_s26 + $0xd0] sm:$0xff] }
  0x1b   : > { %534 = vmatprep.subr.msk.mxu0 %vm211_vm1, %v209_v4  ;;  %v177_v9 = vld [vmem:[%s809_s0] sm:$0xff]  ;;  %v190_v13 = vld [vmem:[%s717_s26 + $0x58] sm:$0xff]  ;;  %v189_v15 = vld [vmem:[%s717_s26 + $0x50] sm:$0xff] }
  0x1c   : > { %v191_v10 = vld [vmem:[%s717_s26 + $0x60] sm:$0xff]  ;;  %v178_v11 = vmul.f32 20.0, %v177_v9  ;;  %v204_v16 = vld [vmem:[%s717_s26 + $0xc8] sm:$0xff]  ;;  %v202_v20 = vld [vmem:[%s717_s26 + $0xb8] sm:$0xff] }
  0x1d   : > { %v188_v17 = vld [vmem:[%s717_s26 + $0x48] sm:$0xff]  ;;  %v203_v18 = vld [vmem:[%s717_s26 + $0xc0] sm:$0xff]  ;;  %v186_v21 = vld [vmem:[%s717_s26 + $0x38] sm:$0xff] }
  0x1e   : > { %535 = vmatpush3.xpose.msk.msra.mxu0 %vm211_vm1, %v193_v5  ;;  %564 = vmatprep.mubr.msk.f32.mxu0 %vm211_vm1, %v178_v11  ;;  %v187_v19 = vld [vmem:[%s717_s26 + $0x40] sm:$0xff]  ;;  %v201_v22 = vld [vmem:[%s717_s26 + $0xb0] sm:$0xff]  ;;  %v200_v24 = vld [vmem:[%s717_s26 + $0xa8] sm:$0xff] }
  0x1f   : > { %536 = vmatprep.subr.msk.mxu0 %vm211_vm1, %v208_v6  ;;  %v185_v23 = vld [vmem:[%s717_s26 + $0x30] sm:$0xff]  ;;  %v184_v25 = vld [vmem:[%s717_s26 + $0x28] sm:$0xff]  ;;  %v199_v26 = vld [vmem:[%s717_s26 + $0xa0] sm:$0xff] }
  0x20   : > { %v183_v27 = vld [vmem:[%s717_s26 + $0x20] sm:$0xff]  ;;  %v198_v28 = vld [vmem:[%s717_s26 + $0x98] sm:$0xff]  ;;  %v197_v30 = vld [vmem:[%s717_s26 + $0x90] sm:$0xff] }
  0x21   : > { %v182_v29 = vld [vmem:[%s717_s26 + $0x18] sm:$0xff]  ;;  %v181_v31 = vld [vmem:[%s717_s26 + $0x10] sm:$0xff]  ;;  %v196_v32 = vld [vmem:[%s717_s26 + $0x88] sm:$0xff] }
  0x22   : > { %537 = vmatpush3.xpose.msk.msra.mxu0 %vm211_vm1, %v192_v7  ;;  %v180_v33 = vld [vmem:[%s717_s26 + $0x8] sm:$0xff]  ;;  %v195_v34 = vld [vmem:[%s717_s26 + $0x80] sm:$0xff] }
  0x23   : > { %538 = vmatprep.subr.msk.mxu0 %vm211_vm1, %v207_v8  ;;  %v179_v35 = vld [vmem:[%s717_s26] sm:$0xff]  ;;  %v401_v54 = vld [vmem:[#allocation3] sm:$0xff] }
  0x24   : > { %v382_v40 = vld [vmem:[#allocation2] sm:$0xff] }
  0x26   : > { %539 = vmatpush3.xpose.msk.msra.mxu0 %vm211_vm1, %v191_v10 }
  0x27   : > { %540 = vmatprep.subr.msk.mxu0 %vm211_vm1, %v206_v12 }
  0x2a   : > { %541 = vmatpush3.xpose.msk.msra.mxu0 %vm211_vm1, %v190_v13 }
  0x2b   : > { %542 = vmatprep.subr.msk.mxu0 %vm211_vm1, %v205_v14 }
  0x2e   : > { %543 = vmatpush3.xpose.msk.msra.mxu0 %vm211_vm1, %v189_v15 }
  0x2f   : > { %544 = vmatprep.subr.msk.mxu0 %vm211_vm1, %v204_v16 }
  0x32   : > { %545 = vmatpush3.xpose.msk.msra.mxu0 %vm211_vm1, %v188_v17 }
  0x33   : > { %546 = vmatprep.subr.msk.mxu0 %vm211_vm1, %v203_v18 }
  0x36   : > { %547 = vmatpush3.xpose.msk.msra.mxu0 %vm211_vm1, %v187_v19 }
  0x37   : > { %548 = vmatprep.subr.msk.mxu0 %vm211_vm1, %v202_v20 }
  0x3a   : > { %549 = vmatpush3.xpose.msk.msra.mxu0 %vm211_vm1, %v186_v21 }
  0x3b   : > { %550 = vmatprep.subr.msk.mxu0 %vm211_vm1, %v201_v22 }
  0x3e   : > { %551 = vmatpush3.xpose.msk.msra.mxu0 %vm211_vm1, %v185_v23 }
  0x3f   : > { %552 = vmatprep.subr.msk.mxu0 %vm211_vm1, %v200_v24 }
  0x42   : > { %553 = vmatpush3.xpose.msk.msra.mxu0 %vm211_vm1, %v184_v25 }
  0x43   : > { %554 = vmatprep.subr.msk.mxu0 %vm211_vm1, %v199_v26 }
  0x46   : > { %555 = vmatpush3.xpose.msk.msra.mxu0 %vm211_vm1, %v183_v27 }
  0x47   : > { %556 = vmatprep.subr.msk.mxu0 %vm211_vm1, %v198_v28 }
  0x4a   : > { %557 = vmatpush3.xpose.msk.msra.mxu0 %vm211_vm1, %v182_v29 }
  0x4b   : > { %558 = vmatprep.subr.msk.mxu0 %vm211_vm1, %v197_v30 }
  0x4e   : > { %559 = vmatpush3.xpose.msk.msra.mxu0 %vm211_vm1, %v181_v31 }
  0x4f   : > { %560 = vmatprep.subr.msk.mxu0 %vm211_vm1, %v196_v32 }
  0x52   : > { %561 = vmatpush3.xpose.msk.msra.mxu0 %vm211_vm1, %v180_v33 }
  0x53   : > { %562 = vmatprep.subr.msk.mxu0 %vm211_vm1, %v195_v34 }
  0x56   : > { %563 = vmatpush3.xpose.msk.msra.mxu0 %vm211_vm1, %v179_v35 }
  0x59   : > { %565 = vmatmul.mubr.msk.f32.vlgmr.msra.gmra.mxu0 %vm211_vm1, %v178_v11 }
 0x119   : > { %v377_v36 = vpop.f32.mrf.mxu0 }
 0x11b   : > { %v379_v37 = vpop.f32.mrf.mxu0 }
 0x11c   : > { %v383_v38 = vmax.f32 %v377_v36, %v379_v37 }
 0x11e   : > { %384 = vmax.xlane.f32.xlu0 %v383_v38 }
 0x1a7   : > { %v385_v41 = vpop.xlane.xlu0 %384 }
 0x1a8   : > { %v386_v42 = vmax.f32 %v382_v40, %v385_v41 }
 0x1aa   : > { %v387_v43 = vsub.f32 %v382_v40, %v386_v42  ;;  %409 = vst.msk [vmem:[#allocation2] sm:$0xff] %vm407_vm2, %v386_v42  ;;  %392 = vperm.xlu0 %609, %v386_v42  }
 0x1ac   : > { %v388_v52 = vmul.f32 1.442695, %v387_v43 }
 0x225   : > { %v393_v44 = vpop.permute.xlu0 %392 }
 0x226   : > { %v395_v45 = vsub.f32 %v377_v36, %v393_v44  ;;  %v396_v46 = vsub.f32 %v379_v37, %v393_v44 }
 0x228   : > { %v397_v47 = vmul.f32 1.442695, %v395_v45  ;;  %v399_v48 = vmul.f32 1.442695, %v396_v46 }
 0x22a   : > { %610 = vpow2.f32 %v397_v47 }
 0x22b   : > { %612 = vpow2.f32 %v399_v48 }
 0x22c   : > { %614 = vpow2.f32 %v388_v52 }
 0x237   : > { %v611_v49 = vpop.eup %610 }
 0x238   : > { %v613_v50 = vpop.eup %612 }
 0x239   : > { %v403_v51 = vadd.f32 %v613_v50, %v611_v49  ;;  %v615_v53 = vpop.eup %614 }
 0x23a   : > { %v402_v55 = vmul.f32 %v615_v53, %v401_v54 }
 0x23b   : > { %404 = vadd.xlane.f32.xlu1 %v403_v51 }
 0x2c3   : > { %413 = sbr.rel (%p529_p8) target bundleno = 738 (0x2e2), region = 36 }
 0x2c4   : > { %v405_v56 = vpop.xlane.xlu1 %404 }
 0x2c5   : > { %v406_v57 = vadd.f32 %v405_v56, %v402_v55 }
 0x2c7   : > { %408 = vst.msk [vmem:[#allocation3] sm:$0xff] %vm407_vm2, %v406_v57 }
 0x2c8   : > { %v414_v60 = vld [vmem:[#allocation2] sm:$0xff] }
 0x2ce   : > { %v415_v58 = vld [vmem:[#allocation3] sm:$0xff] }
 0x2cf   : > { %616 = vlog2.f32 %v415_v58 }
 0x2dc   : > { %v617_v59 = vpop.eup %616 }
 0x2dd   : > { %v417_v61 = vmul.f32 0.6931472, %v617_v59 }
 0x2df   : > { %v418_v62 = vadd.f32 %v417_v61, %v414_v60 }
 0x2e1   : > { %419 = vst.msk [vmem:[%s712_s23] sm:$0xff] %vm407_vm2, %v418_v62 }
 0x2e2 PF: > { %s12_s13 = sadd.s32 1, %s656_s13   ;;  %s812_s9 = smov %s648_s11 }
 0x2e3   : > { %p9_p9 = scmp.ge.s32.totalorder %s12_s13, 6   ;;  %s813_s10 = smov %s652_s12 }
 0x2e4   : > { %s814_s11 = smov %s817_s14  ;;  %s815_s12 = smov %s821_s15 }
 0x2e5   :  { %11 = sbr.rel (!%p9_p9) target bundleno = 3 (0x3), region = 66 }

</bundles_post_ra>
